<compile_context>
chip_gen: v7x
topology: tpu7x:2x2x1
jax: 0.10.0
libtpu: 0.0.40
codegen_flags: <defaults>
</compile_context>

<pallas_src>
import math
import numpy as np
import jax
import jax.numpy as jnp
from jax import lax
from jax.experimental import pallas as pl
from jax.experimental.pallas import tpu as pltpu


# ---------------------------------------------------------------------------
# Pallas kernel: router logits + softmax, output tile [Bt, E, TN]
# ---------------------------------------------------------------------------
def _router_probs_kernel(x_ref, w_ref, probs_t_ref):
    # x_ref: (Bt, TN, D) token tile in its native dtype (bf16 goes straight to
    # the MXU with f32 accumulation -- no (TN, D) f32 upcast copy in VMEM).
    # w_ref: (E, D) resident router weight (same dtype as x).
    # probs_t_ref: (Bt, E, TN) f32 output tile, lane-dense over tokens.
    x = x_ref[...]
    w = w_ref[...]
    bt = x.shape[0]
    # Broadcast the tiny weight over the batch-block so the contraction is a
    # true batched dot_general (same pattern as flash-attn 'bqd,bkd->bqk'),
    # producing (Bt, E, TN) directly -- no transpose needed.
    wb = jnp.broadcast_to(w[None], (bt,) + w.shape)        # (Bt, E, D)
    logits_t = jnp.einsum("bed,bnd->ben", wb, x,
                          preferred_element_type=jnp.float32)
    # Numerically stable softmax over the expert axis (axis 1 here).
    m = jnp.max(logits_t, axis=1, keepdims=True)
    p = jnp.exp(logits_t - m)
    denom = jnp.sum(p, axis=1, keepdims=True)
    # Exact reciprocal (approx=False) so downstream top_k tie behavior is stable.
    probs_t_ref[...] = p * pl.reciprocal(denom, approx=False)


# ---------------------------------------------------------------------------
# Generation-aware blocking / VMEM budgeting
# ---------------------------------------------------------------------------
def _vmem_capacity_bytes():
    try:
        return int(pltpu.get_tpu_info().vmem_capacity_bytes)
    except Exception:
        return 64 * 2**20  # conservative fallback (v7x per-TensorCore)


def _select_blocking(B, N, D, E, x_itemsize, w_itemsize):
    """Pick (bt, tn): batch-block and token-tile sizes, sized from VMEM capacity."""
    vmem_cap = _vmem_capacity_bytes()
    usable = int(vmem_cap * 0.55)               # leave room for compiler internals
    weight_bytes = 2 * E * D * w_itemsize       # resident weight (worst-case 2x)
    avail = max(usable - weight_bytes - 2 * 2**20, 4 * 2**20)
    # Double-buffered bytes per token per grid step: x row + f32 prob column.
    per_tok = 2 * (D * x_itemsize + E * 4)
    budget_tok = max(avail // per_tok, 8)
    # Keep a single x tile <= ~24 MiB and <= 4096 tokens (HBM roofline
    # utilization plateaus around 0.5-1K tokens; bigger only wastes VMEM).
    cap_tok = max((24 * 2**20) // max(D * x_itemsize, 1), 8)
    max_tok = int(min(budget_tok, cap_tok, 4096))

    if N <= max_tok:
        # Small-N path: full token dim per step, block several batches so each
        # DMA stays large (recovers large-tile roofline for small-N, large-B).
        tn = N
        bt = int(min(B, max(1, max_tok // max(N, 1))))
    else:
        # Large-N path: one batch per step, 128-aligned token tiles; ragged
        # last tile is handled by Pallas block padding (no wrapper jnp.pad).
        bt = 1
        tn = int(max(128, (max_tok // 128) * 128))
    return bt, tn


def compute_router_probs_t(x, weight):
    """softmax(x @ weight.T, axis=-1) accumulated in f32, returned TRANSPOSED
    as [B, E, N].

    x: [B, N, D] (any float dtype), weight: [E, D] (nn.Linear layout).
    """
    B, N, D = x.shape
    E = weight.shape[0]
    # Match operand dtypes so the MXU consumes x natively; only the tiny [E, D]
    # weight is (possibly) cast in the wrapper.
    if weight.dtype != x.dtype:
        weight = weight.astype(x.dtype)
    x_itemsize = jnp.dtype(x.dtype).itemsize
    w_itemsize = jnp.dtype(weight.dtype).itemsize

    bt, tn = _select_blocking(B, N, D, E, x_itemsize, w_itemsize)

    # Accurate VMEM accounting: double-buffered x tiles + double-buffered f32
    # output tiles + resident weight + in-kernel intermediates + headroom.
    vmem_cap = _vmem_capacity_bytes()
    need = (2 * bt * tn * D * x_itemsize        # double-buffered x tiles
            + 2 * bt * E * tn * 4               # double-buffered f32 out tiles
            + 2 * E * D * w_itemsize            # resident weight
            + bt * E * D * x_itemsize           # broadcast weight inside kernel
            + 3 * bt * E * tn * 4)              # logits / exp / prob temps
    # TODO(synk): for extreme D where even tn=128 exceeds the per-core VMEM
    # budget, a D-reduction grid axis with an f32 accumulator would be needed.
    vmem_limit = int(min(max(need + need // 4 + (2 << 20), 16 << 20),
                         int(vmem_cap * 0.8)))

    out = pl.pallas_call(
        _router_probs_kernel,
        out_shape=jax.ShapeDtypeStruct((B, E, N), jnp.float32),
        grid_spec=pltpu.PrefetchScalarGridSpec(
            num_scalar_prefetch=0,
            grid=(pl.cdiv(B, bt), pl.cdiv(N, tn)),
            in_specs=[
                # per-(batch-block, token-tile) slab of x
                pl.BlockSpec((bt, tn, D), lambda bi, ti: (bi, ti, 0)),
                # tiny router weight, resident across the whole grid
                pl.BlockSpec((E, D), lambda bi, ti: (0, 0)),
            ],
            # lane-dense output: [B, E, N] with tokens on the lane axis
            out_specs=pl.BlockSpec((bt, E, tn), lambda bi, ti: (bi, 0, ti)),
        ),
        compiler_params=pltpu.CompilerParams(
            dimension_semantics=("parallel", "parallel"),
            vmem_limit_bytes=vmem_limit,
        ),
    )(x, weight)
    return out


# ---------------------------------------------------------------------------
# Expert-priority routing (plain-JAX glue; sequential top_k over experts)
# ---------------------------------------------------------------------------
def epr_route(r_probs_t, c):
    """r_probs_t: [B, E, N] router probs (token-major last). c: host array [E].

    Matches the PyTorch loop: for j = E-1..0 take top-kj tokens of expert j's
    probs among not-yet-taken tokens, write expert id j into M, mark tokens
    taken. A single running [B, N] mask replaces the reference's per-expert
    [B, E, N] -inf scatters (identical scores -> identical top_k results).
    """
    B, E, N = r_probs_t.shape
    T = N
    M = jnp.zeros((B, N), dtype=jnp.int32)  # NOTE: PyTorch uses int64
    taken = jnp.zeros((B, N), dtype=bool)
    batch_idx = jnp.arange(B)[:, None]
    neg_inf = jnp.float32(-jnp.inf)
    # TODO(synk): E sequential sort-based lax.top_k passes over [B, N] dominate
    # end-to-end latency for realistic N; a dedicated partial-selection /
    # priority-assignment Pallas kernel is the highest-value follow-up.
    for j in reversed(range(E)):
        kj = math.floor(float(c[j]) * T)
        if kj > 0:
            scores = jnp.where(taken, neg_inf, r_probs_t[:, j, :])
            _, indices = lax.top_k(scores, kj)  # [B, kj]
            M = M.at[batch_idx, indices].set(j)
            taken = taken.at[batch_idx, indices].set(True)
    M_probs = jnp.take_along_axis(r_probs_t, M[:, None, :], axis=1)[:, 0, :]
    return M, M_probs


def epr_forward(x, weight, c, jitter_noise=0.0):
    # TODO(synk): jitter noise (randn_like * jitter_noise) not implemented;
    # only the default jitter_noise == 0.0 path is supported.
    assert jitter_noise == 0.0
    r_probs_t = compute_router_probs_t(x, weight)
    return epr_route(r_probs_t, c)


# ---------------------------------------------------------------------------
# Reference (mirrors the PyTorch scatter-based loop) for correctness checking
# ---------------------------------------------------------------------------
def _route_reference(r_probs, c):
    B, N, E = r_probs.shape
    T = N
    r_modified = jnp.transpose(r_probs, (0, 2, 1))  # [B, E, N]
    M = jnp.zeros((B, N), dtype=jnp.int32)
    batch_idx = jnp.arange(B)[:, None]
    for j in reversed(range(E)):
        kj = math.floor(float(c[j]) * T)
        if kj > 0:
            _, indices = lax.top_k(r_modified[:, j, :], kj)
            M = M.at[batch_idx, indices].set(j)
            r_modified = r_modified.at[
                jnp.arange(B)[:, None, None],
                jnp.arange(E)[None, :, None],
                indices[:, None, :],
            ].set(-jnp.inf)
    M_probs = jnp.take_along_axis(r_probs, M[..., None], axis=-1)[..., 0]
    return M, M_probs


if __name__ == "__main__":
    B, N, D, E = 2, 16, 32, 4  # batch, tokens, embedding_dim, num_experts

    key = jax.random.PRNGKey(0)
    kx, kw = jax.random.split(key)
    x = jax.random.normal(kx, (B, N, D), dtype=jnp.float32)
    # nn.Linear(embedding_dim, num_experts, bias=False): weight [E, D],
    # init uniform(-0.02, 0.02); bias is None.
    weight = jax.random.uniform(kw, (E, D), dtype=jnp.float32,
                                minval=-0.02, maxval=0.02)
    # capacity fractions per expert (host-side, static — like the PyTorch c tensor)
    c = np.array([0.5, 0.25, 0.125, 0.125], dtype=np.float32)

    M, M_probs = epr_forward(x, weight, c)
    jax.block_until_ready((M, M_probs))

    # --- sanity checks -----------------------------------------------------
    probs_t_kernel = compute_router_probs_t(x, weight)           # [B, E, N]
    probs_ref = jax.nn.softmax(
        x.astype(jnp.float32) @ weight.T.astype(jnp.float32), axis=-1)  # [B, N, E]
    assert jnp.allclose(probs_t_kernel,
                        jnp.transpose(probs_ref, (0, 2, 1)),
                        atol=1e-5), "router probs mismatch"

    M_ref, M_probs_ref = _route_reference(probs_ref, c)
    assert M.shape == (B, N) and M.dtype == jnp.int32
    assert M_probs.shape == (B, N) and M_probs.dtype == jnp.float32
    assert jnp.array_equal(M, M_ref), "expert assignment mismatch vs reference"
    assert jnp.allclose(M_probs, M_probs_ref, atol=1e-6), "M_probs mismatch"
    # Every M_probs entry must equal r_probs gathered at the assigned expert.
    assert jnp.allclose(
        M_probs,
        jnp.take_along_axis(probs_ref, M[..., None], axis=-1)[..., 0],
        atol=1e-6)

    print("KERNEL_OK")
</pallas_src>

<mosaic_0001>
module attributes {stable_mosaic.version = 11 : i64} {
  func.func @_router_probs_kernel(%arg0: i32, %arg1: i32, %arg2: memref<2x16x32xf32, #tpu.memory_space<vmem>>, %arg3: memref<4x32xf32, #tpu.memory_space<vmem>>, %arg4: memref<2x4x16xf32, #tpu.memory_space<vmem>>) attributes {dimension_semantics = [#tpu.dimension_semantics<parallel>, #tpu.dimension_semantics<parallel>], iteration_bounds = array<i64: 1, 1>, scalar_prefetch = 0 : i64, scratch_operands = 0 : i64, tpu.core_type = #tpu.core_type<tc>, window_params = [{transform_indices = @transform_0, window_bounds = array<i64: 2, 16, 32>}, {pipeline_mode = #tpu.pipeline_mode<synchronous>, transform_indices = @transform_1, window_bounds = array<i64: 4, 32>}, {transform_indices = @transform_2, window_bounds = array<i64: 2, 4, 16>}]} {
    %c0 = arith.constant 0 : index
    %c0_0 = arith.constant 0 : index
    %c0_1 = arith.constant 0 : index
    %0 = vector.load %arg2[%c0, %c0_0, %c0_1] : memref<2x16x32xf32, #tpu.memory_space<vmem>>, vector<2x16x32xf32>
    %c0_2 = arith.constant 0 : index
    %c0_3 = arith.constant 0 : index
    %1 = vector.load %arg3[%c0_2, %c0_3] : memref<4x32xf32, #tpu.memory_space<vmem>>, vector<4x32xf32>
    %2 = vector.shape_cast %1 : vector<4x32xf32> to vector<1x4x32xf32>
    %3 = vector.shape_cast %2 : vector<1x4x32xf32> to vector<1x4x32xf32>
    %4 = vector.broadcast %3 : vector<1x4x32xf32> to vector<2x4x32xf32>
    "tpu.trace_start"() <{level = 10 : i32, message = "bed,bnd->ben"}> : () -> ()
    %cst = arith.constant dense<0.000000e+00> : vector<2x4x16xf32>
    %5 = tpu.matmul %4, %0, %cst {dimension_numbers = #tpu.dot_dimension_numbers<[2], [2], [1], [1], [0, 0, 0, 1, 1, 1], [0], [0]>} : vector<2x4x32xf32>, vector<2x16x32xf32>, vector<2x4x16xf32> -> vector<2x4x16xf32>
    "tpu.trace_stop"() : () -> ()
    %cst_4 = arith.constant dense<0xFF800000> : vector<2x16xf32>
    %6 = vector.multi_reduction <maximumf>, %5, %cst_4 [1] : vector<2x4x16xf32> to vector<2x16xf32>
    %7 = vector.shape_cast %6 : vector<2x16xf32> to vector<2x1x16xf32>
    %8 = vector.broadcast %7 : vector<2x1x16xf32> to vector<2x4x16xf32>
    %9 = arith.subf %5, %8 : vector<2x4x16xf32>
    %10 = math.exp %9 : vector<2x4x16xf32>
    %cst_5 = arith.constant dense<0.000000e+00> : vector<2x16xf32>
    %11 = vector.multi_reduction <add>, %10, %cst_5 [1] : vector<2x4x16xf32> to vector<2x16xf32>
    %12 = vector.shape_cast %11 : vector<2x16xf32> to vector<2x1x16xf32>
    %13 = tpu.reciprocal %12 : vector<2x1x16xf32> -> vector<2x1x16xf32>
    %14 = vector.broadcast %13 : vector<2x1x16xf32> to vector<2x4x16xf32>
    %15 = arith.mulf %10, %14 : vector<2x4x16xf32>
    %c0_6 = arith.constant 0 : index
    %c0_7 = arith.constant 0 : index
    %c0_8 = arith.constant 0 : index
    %16 = vector.load %arg4[%c0_6, %c0_7, %c0_8] : memref<2x4x16xf32, #tpu.memory_space<vmem>>, vector<2x4x16xf32>
    tpu.vector_store %arg4[%c0_6, %c0_7, %c0_8], %15 {strides = array<i32>} : memref<2x4x16xf32, #tpu.memory_space<vmem>>, vector<2x4x16xf32>,
    return
  }
  func.func @transform_0(%arg0: i32, %arg1: i32) -> (i32, i32, i32) {
    %c0_i32 = arith.constant 0 : i32
    %c0_i32_0 = arith.constant 0 : i32
    return %arg0, %arg1, %c0_i32 : i32, i32, i32
  }
  func.func @transform_1(%arg0: i32, %arg1: i32) -> (i32, i32) {
    %c0_i32 = arith.constant 0 : i32
    %c0_i32_0 = arith.constant 0 : i32
    %c0_i32_1 = arith.constant 0 : i32
    return %c0_i32, %c0_i32_0 : i32, i32
  }
  func.func @transform_2(%arg0: i32, %arg1: i32) -> (i32, i32, i32) {
    %c0_i32 = arith.constant 0 : i32
    %c0_i32_0 = arith.constant 0 : i32
    return %arg0, %c0_i32, %arg1 : i32, i32, i32
  }
}

</mosaic_0001>

<bundles_post_ra>
// kernel: tpu_custom_call.1
= control target key start
LH: loop header
LB: loop body
LE: loop exit
PB: predicated region body
PF: predicated region fallthrough
CT: control target
= control target key end

     0   :  { %7 = vsyncpa [#allocation3], 0  ;;  %s449_s0 = inlined_call_operand.hbm [shape: f32[2,16,32], index: 0, kind: input, shape index: {}]   ;;  %s450_s1 = inlined_call_operand.hbm [shape: f32[4,32], index: 1, kind: input, shape index: {}]   ;;  %s451_s2 = inlined_call_operand.hbm [shape: f32[2,4,16], index: 2, kind: output, shape index: {}]  }
   0x1   :  { %8 = vsyncpa [#allocation6], 0 }
   0x2   :  { %9 = vsyncpa [#allocation4], 0  ;;  %s382_s9 = smov [#allocation2]   ;;  %s310_s13 = scalar_lea.hbm %s449_s0, 512 }
   0x3   :  { %s15_s10 = sshll.u32 %s382_s9, 4  ;;  %p311_p0 = scmp.ne.s32.totalorder %s449_s0, %s310_s13  ;;  %s16_s10 = int_to_ptr.vmem [resolvable:$true] %s15_s10 }
   0x4   :  { %p314_p1 = scmp.lt.u32.totalorder %s310_s13, %s449_s0 }
   0x6   :  { %p316_p2 = pnand %p314_p1, %p311_p0 }
   0x8   :  { %319 = shalt.err (!%p316_p2)
}
   0x9   :  { %s320_s18 = scalar_lea.vmem %s16_s10, 512  ;;  %p325_p4 = scmp.lt.s32.totalorder %s16_s10, %s16_s10 }
   0xa   :  { %p321_p3 = scmp.ne.s32.totalorder %s16_s10, %s320_s18  ;;  %p326_p5 = scmp.lt.s32.totalorder %s320_s18, %s320_s18 }
   0xc   :  { %p327_p6 = por %p326_p5, %p325_p4 }
   0xe   :  { %p328_p7 = pnand %p327_p6, %p321_p3 }
  0x10   :  { %331 = shalt.err (!%p328_p7)
}
  0x11   :  { %s383_s19 = smov 128   ;;  %s384_s20 = smov 8  }
  0x12   :  { %21 = dma.hbm_to_vmem [thread:$0]  %s449_s0, 512, %s16_s10, [#allocation3], %s383_s19, %s383_s19, %s384_s20  }
  0x13   :  { %s385_s23 = smov [#allocation5]   ;;  %s332_s27 = scalar_lea.hbm %s450_s1, 64 }
  0x14   :  { %s28_s24 = sshll.u32 %s385_s23, 4  ;;  %p333_p8 = scmp.ne.s32.totalorder %s450_s1, %s332_s27  ;;  %s29_s24 = int_to_ptr.vmem [resolvable:$true] %s28_s24 }
  0x15   :  { %p336_p9 = scmp.lt.u32.totalorder %s332_s27, %s450_s1 }
  0x17   :  { %p338_p10 = pnand %p336_p9, %p333_p8 }
  0x19   :  { %341 = shalt.err (!%p338_p10)
}
  0x1a   :  { %s342_s4 = scalar_lea.vmem %s29_s24, 64  ;;  %p347_p12 = scmp.lt.s32.totalorder %s29_s24, %s29_s24 }
  0x1b   :  { %p343_p11 = scmp.ne.s32.totalorder %s29_s24, %s342_s4  ;;  %p348_p13 = scmp.lt.s32.totalorder %s342_s4, %s342_s4 }
  0x1d   :  { %p349_p0 = por %p348_p13, %p347_p12 }
  0x1f   :  { %p350_p1 = pnand %p349_p0, %p343_p11 }
  0x21   :  { %353 = shalt.err (!%p350_p1)
}
  0x22   :  { %31 = dma.hbm_to_vmem [thread:$0]  %s450_s1, 64, %s29_s24, [#allocation6]  }
  0x23   :  { %376 = dma.done.wait [#allocation3], 512  }
  0x24   :  { %377 = vsyncadd [#allocation3], 4294966784 }
  0x25   :  { %378 = dma.done.wait [#allocation6], 64  }
  0x26   :  { %379 = vsyncadd [#allocation6], 4294967232  ;;  %v386_v0 = vmov 0.0|0.0   ;;  %vm387_vm0 = vmmov 0   ;;  %v388_v1 = vmov 0.0   ;;  %vm43_vm1 = vcmask 261120  }
  0x27   :  { %284 = vmatprep.subr.bf16.mxu0 %v386_v0  ;;  %288 = vmatprep.subr.bf16.mxu1 %v386_v0  ;;  %vm286_vm2 = vmpackc.low %vm43_vm1, %vm43_vm1  ;;  %v38_v2 = vld [vmem:[#allocation2] sm:$0xff]  ;;  %v39_v3 = vld [vmem:[#allocation2 + $0x8] sm:$0xff]  ;;  %vm199_vm3 = vcmask 125952   ;;  %s389_s1 = smov [#allocation7]  }
  0x28   :  { %274 = vmatprep.mubr.msk.f32.mxu0 %vm387_vm0, %v388_v1  ;;  %281 = vmatprep.mubr.msk.f32.mxu1 %vm387_vm0, %v388_v1  ;;  %v40_v4 = vld [vmem:[#allocation2 + $0x10] sm:$0xff]  ;;  %v285_v5 = vpack.c.bf16 %v39_v3, %v38_v2  ;;  %v41_v6 = vld [vmem:[#allocation2 + $0x18] sm:$0xff]  ;;  %v42_v8 = vld [vmem:[#allocation5] sm:$0xf]  ;;  %s245_s6 = sshll.u32 %s389_s1, 4  ;;  %s246_s6 = int_to_ptr.vmem [resolvable:$true] %s245_s6 }
  0x29   :  { %v289_v7 = vpack.c.bf16 %v41_v6, %v40_v4  ;;  %s354_s7 = scalar_lea.vmem %s246_s6, 128  ;;  %p359_p3 = scmp.lt.s32.totalorder %s246_s6, %s246_s6 }
  0x2a   :  { %287 = vmatpush3.bf16.xpose.msk.msra.mxu0 %vm286_vm2, %v285_v5  ;;  %p355_p2 = scmp.ne.s32.totalorder %s246_s6, %s354_s7  ;;  %p360_p4 = scmp.lt.s32.totalorder %s354_s7, %s354_s7 }
  0x2b   :  { %291 = vmatpush3.bf16.xpose.msk.msra.mxu1 %vm286_vm2, %v289_v7 }
  0x2c   :  { %p361_p5 = por %p360_p4, %p359_p3 }
  0x2e   :  { %p362_p6 = pnand %p361_p5, %p355_p2 }
  0x31   :  { %275 = vmatmul.mubr.msk.f32.vlgmr.msra.gmra.mrb[0].mxu0 %vm43_vm1, %v42_v8 }
  0x32   :  { %282 = vmatmul.mubr.msk.f32.vlgmr.msra.gmra.mrb[0].mxu1 %vm43_vm1, %v42_v8 }
 0x104   :  { %v119_v9 = vpop.f32.mrb[0].mxu0 }
 0x105   :  { %v200_v10 = vsel %vm199_vm3, %v119_v9, -inf  ;;  %v195_v11 = vpop.f32.mrb[0].mxu1  ;;  %v276_v12 = vpop.f32.mrb[1].mxu0 }
 0x106   :  { %v201_v13 = vrot.slane %v200_v10, 4  ;;  %v207_v14 = vsel %vm199_vm3, %v195_v11, -inf  ;;  %v283_v15 = vpop.f32.mrb[1].mxu1 }
 0x107   :  { %v208_v16 = vrot.slane %v207_v14, 4 }
 0x108   :  { %v202_v17 = vmax.f32 %v200_v10, %v201_v13 }
 0x109   :  { %v209_v18 = vmax.f32 %v207_v14, %v208_v16 }
 0x10a   :  { %v203_v19 = vrot.slane %v202_v17, 2 }
 0x10b   :  { %v210_v20 = vrot.slane %v209_v18, 2 }
 0x10c   :  { %v204_v21 = vmax.f32 %v202_v17, %v203_v19 }
 0x10d   :  { %v211_v22 = vmax.f32 %v209_v18, %v210_v20 }
 0x10e   :  { %v205_v23 = vrot.slane %v204_v21, 1 }
 0x10f   :  { %v212_v24 = vrot.slane %v211_v22, 1 }
 0x110   :  { %v206_v25 = vmax.f32 %v204_v21, %v205_v23 }
 0x111   :  { %v213_v26 = vmax.f32 %v211_v22, %v212_v24 }
 0x112   :  { %v214_v27 = vsub.f32 %v119_v9, %v206_v25 }
 0x113   :  { %v215_v28 = vsub.f32 %v195_v11, %v213_v26 }
 0x114   :  { %v216_v29 = vmul.f32 1.442695, %v214_v27 }
 0x115   :  { %v218_v30 = vmul.f32 1.442695, %v215_v28 }
 0x116   :  { %302 = vpow2.f32 %v216_v29 }
 0x117   :  { %304 = vpow2.f32 %v218_v30 }
 0x120   :  { %v303_v31 = vpop.eup %302 }
 0x121   :  { %v305_v32 = vpop.eup %304  ;;  %v220_v33 = vsel %vm199_vm3, %v303_v31, 0.0 }
 0x122   :  { %v221_v34 = vrot.slane %v220_v33, 4  ;;  %v227_v35 = vsel %vm199_vm3, %v305_v32, 0.0 }
 0x123   :  { %v228_v36 = vrot.slane %v227_v35, 4 }
 0x124   :  { %v222_v37 = vadd.f32 %v221_v34, %v220_v33 }
 0x125   :  { %v229_v38 = vadd.f32 %v228_v36, %v227_v35 }
 0x126   :  { %v223_v39 = vrot.slane %v222_v37, 2 }
 0x127   :  { %v230_v40 = vrot.slane %v229_v38, 2 }
 0x128   :  { %v224_v41 = vadd.f32 %v223_v39, %v222_v37 }
 0x129   :  { %v231_v42 = vadd.f32 %v230_v40, %v229_v38 }
 0x12a   :  { %v225_v43 = vrot.slane %v224_v41, 1 }
 0x12b   :  { %v232_v44 = vrot.slane %v231_v42, 1 }
 0x12c   :  { %v226_v45 = vadd.f32 %v225_v43, %v224_v41 }
 0x12d   :  { %v233_v46 = vadd.f32 %v232_v44, %v231_v42 }
 0x12e   :  { %306 = vrcp.f32 %v226_v45 }
 0x12f   :  { %308 = vrcp.f32 %v233_v46 }
 0x138   :  { %v307_v47 = vpop.eup %306 }
 0x139   :  { %v309_v48 = vpop.eup %308  ;;  %v236_v49 = vmul.f32 %v307_v47, %v303_v31 }
 0x13a   :  { %v237_v50 = vmul.f32 %v309_v48, %v305_v32 }
 0x13b   :  { %238 = vst.msk [vmem:[#allocation7] sm:$0xf] %vm199_vm3, %v236_v49 }
 0x13c   :  { %239 = vst.msk [vmem:[#allocation7 + $0x4] sm:$0xf] %vm199_vm3, %v237_v50 }
 0x13d   :  { %365 = shalt.err (!%p362_p6)
}
 0x13e   :  { %s366_s10 = scalar_lea.hbm %s451_s2, 128 }
 0x13f   :  { %p367_p7 = scmp.ne.s32.totalorder %s451_s2, %s366_s10  ;;  %p370_p8 = scmp.lt.u32.totalorder %s366_s10, %s451_s2 }
 0x141   :  { %p372_p9 = pnand %p370_p8, %p367_p7 }
 0x143   :  { %375 = shalt.err (!%p372_p9)
}
 0x144   :  { %s390_s15 = smov 64   ;;  %s391_s16 = smov 4  }
 0x145   :  { %251 = dma.vmem_to_hbm [thread:$0]  %s246_s6, 128, %s451_s2, [#allocation4], %s390_s15, %s390_s15, %s391_s16  }
 0x146   :  { %380 = dma.done.wait [#allocation4], 128  }
 0x147   :  { %381 = vsyncadd [#allocation4], 4294967168 }
 0x148   :  { %255 = vsyncpa [#allocation3], 1 }
 0x149   :  { %256 = vsyncpa [#allocation6], 1 }
 0x14a   :  { %257 = vsyncpa [#allocation4], 1 }

</bundles_post_ra>
